<compile_context>
chip_gen: v6e
topology: v6e:2x2x1
jax: 0.10.0
libtpu: 0.0.40
codegen_flags: <defaults>
</compile_context>

<pallas_src>
from functools import partial

import jax
import jax.numpy as jnp
from jax.experimental import pallas as pl
from jax.experimental.pallas import tpu as pltpu

EPS = 1e-5


def _te_bn2d_kernel(x_ref, gamma_ref, beta_ref, temb_ref, o_ref):
    # x_ref:     (TN, tc, HW)  activations (TN = T*N, HW = H*W)
    # gamma_ref: (1,  tc, 1)   BN affine scale for this channel tile
    # beta_ref:  (1,  tc, 1)   BN affine shift for this channel tile
    # temb_ref:  (TN, 1,  1)   time_embed[t] replicated to rows r = t*N + n
    x = x_ref[...]
    if x.dtype != jnp.float32:
        x = x.astype(jnp.float32)

    tn, _, hw = x.shape
    inv_count = jnp.float32(1.0 / (tn * hw))

    # Single sweep over the block: per-channel sum and sum-of-squares
    # (biased variance, f32 accumulation).  Axis-0 reduction is cheap VALU
    # vreg adds; axis-2 (lanes) goes to the XLU, which is a separate slot.
    s = jnp.sum(x, axis=(0, 2), keepdims=True)            # (1, tc, 1)
    s2 = jnp.sum(x * x, axis=(0, 2), keepdims=True)       # (1, tc, 1)
    mean = s * inv_count
    var = s2 * inv_count - mean * mean
    inv_std = jax.lax.rsqrt(var + EPS)

    # Fold BN constants per channel, then fold in the per-time embedding so
    # the full-size elementwise apply is only (a_t*x + b_t) * x.
    a = gamma_ref[...] * inv_std                           # (1, tc, 1)
    b = beta_ref[...] - a * mean                           # (1, tc, 1)
    at = temb_ref[...] * a                                 # (TN, tc, 1)
    bt = temb_ref[...] * b                                 # (TN, tc, 1)

    o_ref[...] = ((at * x + bt) * x).astype(o_ref.dtype)


def _choose_channel_tile(C, slab_bytes_per_channel, budget_bytes=6 << 20):
    """Largest channel tile (multiple of 8 dividing C, or C itself) whose
    x-block stays under the per-buffer VMEM budget."""
    if C % 8 != 0:
        return C                      # block dim must then equal the full dim
    best = 8
    for tc in range(8, C + 1, 8):
        if C % tc == 0 and tc * slab_bytes_per_channel <= budget_bytes:
            best = tc
    return best
    # TODO(synk): if even tc=8 overflows VMEM (enormous T*N*H*W per channel),
    # switch to a two-pass structure (stats-accumulation pass + apply pass).


@jax.jit
def time_efficient_batchnorm2d(x, gamma, beta, time_embed):
    """x: [T, N, C, H, W]. Returns the module's forward output, same shape/dtype."""
    T, N, C, H, W = x.shape
    TN, HW = T * N, H * W

    # Free views only (merging adjacent axes) — no transposes, no extra HBM
    # traffic.  Lane density is best when H*W is a multiple of 128; otherwise
    # the layout is still correct, stores are just partially masked.
    xk = x.reshape(TN, C, HW)
    g = gamma.reshape(1, C, 1).astype(jnp.float32)
    b = beta.reshape(1, C, 1).astype(jnp.float32)
    te = jnp.repeat(time_embed.astype(jnp.float32), N).reshape(TN, 1, 1)

    tc = _choose_channel_tile(C, TN * HW * 4)

    out = pl.pallas_call(
        _te_bn2d_kernel,
        out_shape=jax.ShapeDtypeStruct((TN, C, HW), x.dtype),
        grid=(pl.cdiv(C, tc),),
        in_specs=[
            pl.BlockSpec((TN, tc, HW), lambda c: (0, c, 0)),
            pl.BlockSpec((1, tc, 1), lambda c: (0, c, 0)),
            pl.BlockSpec((1, tc, 1), lambda c: (0, c, 0)),
            pl.BlockSpec((TN, 1, 1), lambda c: (0, 0, 0)),
        ],
        out_specs=pl.BlockSpec((TN, tc, HW), lambda c: (0, c, 0)),
        compiler_params=pltpu.CompilerParams(
            dimension_semantics=("parallel",),
            vmem_limit_bytes=48 << 20,
        ),
    )(xk, g, b, te)

    return out.reshape(T, N, C, H, W)


def _reference(x, gamma, beta, time_embed):
    # Pure-JAX reference of the PyTorch forward (training-mode BN, biased var).
    T, N, C, H, W = x.shape
    xf = x.astype(jnp.float32)
    mean = jnp.mean(xf, axis=(0, 1, 3, 4), keepdims=True)
    var = jnp.mean((xf - mean) ** 2, axis=(0, 1, 3, 4), keepdims=True)
    bn = (xf - mean) * jax.lax.rsqrt(var + EPS)
    bn = bn * gamma.reshape(1, 1, C, 1, 1) + beta.reshape(1, 1, C, 1, 1)
    scaled = xf * time_embed.reshape(T, 1, 1, 1, 1)
    return (bn * scaled).astype(x.dtype)


if __name__ == "__main__":
    # Module: out_plane = C channels, time_step = T.
    T, N, C, H, W = 2, 2, 4, 16, 16

    key = jax.random.PRNGKey(0)
    kx, kg, kb, kt = jax.random.split(key, 4)
    x = jax.random.normal(kx, (T, N, C, H, W), dtype=jnp.float32)

    # Non-trivial (but deterministic) parameter values so the affine/einsum
    # paths are actually exercised; the module's forward is init-agnostic.
    gamma = 1.0 + 0.1 * jax.random.normal(kg, (C,), dtype=jnp.float32)   # bn.weight
    beta = 0.1 * jax.random.normal(kb, (C,), dtype=jnp.float32)          # bn.bias
    time_embed = 1.0 + 0.1 * jax.random.normal(kt, (T,), dtype=jnp.float32)
    # TODO(synk): running_mean/running_var buffer updates (in-place training
    # side effects of nn.BatchNorm2d) are not modeled; only the forward output.

    out = time_efficient_batchnorm2d(x, gamma, beta, time_embed)
    out = jax.block_until_ready(out)

    ref = _reference(x, gamma, beta, time_embed)
    assert out.shape == x.shape and out.dtype == x.dtype
    assert jnp.allclose(out, ref, atol=1e-4, rtol=1e-4)

    print("KERNEL_OK")
</pallas_src>

<mosaic_0001>
module attributes {stable_mosaic.version = 11 : i64} {
  func.func @_te_bn2d_kernel(%arg0: i32, %arg1: memref<4x4x256xf32, #tpu.memory_space<vmem>>, %arg2: memref<1x4x1xf32, #tpu.memory_space<vmem>>, %arg3: memref<1x4x1xf32, #tpu.memory_space<vmem>>, %arg4: memref<4x1x1xf32, #tpu.memory_space<vmem>>, %arg5: memref<4x4x256xf32, #tpu.memory_space<vmem>>) attributes {dimension_semantics = [#tpu.dimension_semantics<parallel>], iteration_bounds = array<i64: 1>, scalar_prefetch = 0 : i64, scratch_operands = 0 : i64, tpu.core_type = #tpu.core_type<tc>, window_params = [{transform_indices = @transform_0, window_bounds = array<i64: 4, 4, 256>}, {transform_indices = @transform_1, window_bounds = array<i64: 1, 4, 1>}, {transform_indices = @transform_2, window_bounds = array<i64: 1, 4, 1>}, {pipeline_mode = #tpu.pipeline_mode<synchronous>, transform_indices = @transform_3, window_bounds = array<i64: 4, 1, 1>}, {transform_indices = @transform_4, window_bounds = array<i64: 4, 4, 256>}]} {
    %c0 = arith.constant 0 : index
    %c0_0 = arith.constant 0 : index
    %c0_1 = arith.constant 0 : index
    %0 = vector.load %arg1[%c0, %c0_0, %c0_1] : memref<4x4x256xf32, #tpu.memory_space<vmem>>, vector<4x4x256xf32>
    %cst = arith.constant dense<0.000000e+00> : vector<4xf32>
    %1 = vector.multi_reduction <add>, %0, %cst [0, 2] : vector<4x4x256xf32> to vector<4xf32>
    %2 = vector.shape_cast %1 : vector<4xf32> to vector<1x4x1xf32>
    %3 = arith.mulf %0, %0 : vector<4x4x256xf32>
    %cst_2 = arith.constant dense<0.000000e+00> : vector<4xf32>
    %4 = vector.multi_reduction <add>, %3, %cst_2 [0, 2] : vector<4x4x256xf32> to vector<4xf32>
    %5 = vector.shape_cast %4 : vector<4xf32> to vector<1x4x1xf32>
    %cst_3 = arith.constant 9.765625E-4 : f32
    %6 = vector.broadcast %cst_3 : f32 to vector<1x4x1xf32>
    %7 = arith.mulf %2, %6 : vector<1x4x1xf32>
    %cst_4 = arith.constant 9.765625E-4 : f32
    %8 = vector.broadcast %cst_4 : f32 to vector<1x4x1xf32>
    %9 = arith.mulf %5, %8 : vector<1x4x1xf32>
    %10 = arith.mulf %7, %7 : vector<1x4x1xf32>
    %11 = arith.subf %9, %10 : vector<1x4x1xf32>
    %cst_5 = arith.constant 9.99999974E-6 : f32
    %12 = vector.broadcast %cst_5 : f32 to vector<1x4x1xf32>
    %13 = arith.addf %11, %12 : vector<1x4x1xf32>
    %14 = math.rsqrt %13 : vector<1x4x1xf32>
    %c0_6 = arith.constant 0 : index
    %c0_7 = arith.constant 0 : index
    %c0_8 = arith.constant 0 : index
    %15 = vector.load %arg2[%c0_6, %c0_7, %c0_8] : memref<1x4x1xf32, #tpu.memory_space<vmem>>, vector<1x4x1xf32>
    %16 = arith.mulf %15, %14 : vector<1x4x1xf32>
    %c0_9 = arith.constant 0 : index
    %c0_10 = arith.constant 0 : index
    %c0_11 = arith.constant 0 : index
    %17 = vector.load %arg3[%c0_9, %c0_10, %c0_11] : memref<1x4x1xf32, #tpu.memory_space<vmem>>, vector<1x4x1xf32>
    %18 = arith.mulf %16, %7 : vector<1x4x1xf32>
    %19 = arith.subf %17, %18 : vector<1x4x1xf32>
    %c0_12 = arith.constant 0 : index
    %c0_13 = arith.constant 0 : index
    %c0_14 = arith.constant 0 : index
    %20 = vector.load %arg4[%c0_12, %c0_13, %c0_14] : memref<4x1x1xf32, #tpu.memory_space<vmem>>, vector<4x1x1xf32>
    %21 = vector.broadcast %20 : vector<4x1x1xf32> to vector<4x4x1xf32>
    %22 = vector.broadcast %16 : vector<1x4x1xf32> to vector<4x4x1xf32>
    %23 = arith.mulf %21, %22 : vector<4x4x1xf32>
    %c0_15 = arith.constant 0 : index
    %c0_16 = arith.constant 0 : index
    %c0_17 = arith.constant 0 : index
    %24 = vector.load %arg4[%c0_15, %c0_16, %c0_17] : memref<4x1x1xf32, #tpu.memory_space<vmem>>, vector<4x1x1xf32>
    %25 = vector.broadcast %24 : vector<4x1x1xf32> to vector<4x4x1xf32>
    %26 = vector.broadcast %19 : vector<1x4x1xf32> to vector<4x4x1xf32>
    %27 = arith.mulf %25, %26 : vector<4x4x1xf32>
    %28 = vector.broadcast %23 : vector<4x4x1xf32> to vector<4x4x256xf32>
    %29 = arith.mulf %28, %0 : vector<4x4x256xf32>
    %30 = vector.broadcast %27 : vector<4x4x1xf32> to vector<4x4x256xf32>
    %31 = arith.addf %29, %30 : vector<4x4x256xf32>
    %32 = arith.mulf %31, %0 : vector<4x4x256xf32>
    %c0_18 = arith.constant 0 : index
    %c0_19 = arith.constant 0 : index
    %c0_20 = arith.constant 0 : index
    %33 = vector.load %arg5[%c0_18, %c0_19, %c0_20] : memref<4x4x256xf32, #tpu.memory_space<vmem>>, vector<4x4x256xf32>
    tpu.vector_store %arg5[%c0_18, %c0_19, %c0_20], %32 {strides = array<i32>} : memref<4x4x256xf32, #tpu.memory_space<vmem>>, vector<4x4x256xf32>,
    return
  }
  func.func @transform_0(%arg0: i32) -> (i32, i32, i32) {
    %c0_i32 = arith.constant 0 : i32
    %c0_i32_0 = arith.constant 0 : i32
    %c0_i32_1 = arith.constant 0 : i32
    return %c0_i32, %arg0, %c0_i32_0 : i32, i32, i32
  }
  func.func @transform_1(%arg0: i32) -> (i32, i32, i32) {
    %c0_i32 = arith.constant 0 : i32
    %c0_i32_0 = arith.constant 0 : i32
    %c0_i32_1 = arith.constant 0 : i32
    return %c0_i32, %arg0, %c0_i32_0 : i32, i32, i32
  }
  func.func @transform_2(%arg0: i32) -> (i32, i32, i32) {
    %c0_i32 = arith.constant 0 : i32
    %c0_i32_0 = arith.constant 0 : i32
    %c0_i32_1 = arith.constant 0 : i32
    return %c0_i32, %arg0, %c0_i32_0 : i32, i32, i32
  }
  func.func @transform_3(%arg0: i32) -> (i32, i32, i32) {
    %c0_i32 = arith.constant 0 : i32
    %c0_i32_0 = arith.constant 0 : i32
    %c0_i32_1 = arith.constant 0 : i32
    %c0_i32_2 = arith.constant 0 : i32
    return %c0_i32, %c0_i32_0, %c0_i32_1 : i32, i32, i32
  }
  func.func @transform_4(%arg0: i32) -> (i32, i32, i32) {
    %c0_i32 = arith.constant 0 : i32
    %c0_i32_0 = arith.constant 0 : i32
    %c0_i32_1 = arith.constant 0 : i32
    return %c0_i32, %arg0, %c0_i32_0 : i32, i32, i32
  }
}

</mosaic_0001>

<bundles_post_ra>
// kernel: time_efficient_batchnorm2d.1
= control target key start
LH: loop header
LB: loop body
LE: loop exit
PB: predicated region body
PF: predicated region fallthrough
CT: control target
= control target key end

     0   :  { %vm33_vm0 = vcmask 1043456   ;;  %v232_v46 = vmov 0   ;;  %s372_s0 = inlined_call_operand.vmem [shape: f32[4,4,256], index: 0, kind: input, shape index: {}]   ;;  %s373_s1 = inlined_call_operand.vmem [shape: f32[1,4,1], index: 1, kind: input, shape index: {}]   ;;  %s374_s3 = inlined_call_operand.vmem [shape: f32[4,1,1], index: 3, kind: input, shape index: {}]   ;;  %s375_s2 = inlined_call_operand.vmem [shape: f32[1,4,1], index: 2, kind: input, shape index: {}]   ;;  %s376_s4 = inlined_call_operand.vmem [shape: f32[4,4,256], index: 4, kind: output, shape index: {}]  }
   0x1   :  { %v261_v0 = vld [vmem:[%s372_s0] sm:$0xff]  ;;  %v266_v1 = vld [vmem:[%s372_s0 + $0x8] sm:$0xff]  ;;  %v271_v2 = vld [vmem:[%s372_s0 + $0x10] sm:$0xff]  ;;  %225 = vset.pattern.permute.xlu0 %v232_v46  ;;  %224 = vset.pattern.permute.xlu1 %v232_v46 }
   0x2   :  { %v275_v3 = vcombine.high %v261_v0, %v261_v0  ;;  %v279_v4 = vcombine.high %v266_v1, %v266_v1  ;;  %v34_v5 = vsel %vm33_vm0, %v261_v0, 0.0  ;;  %v37_v7 = vsel %vm33_vm0, %v266_v1, 0.0  ;;  %v298_v12 = vld [vmem:[%s372_s0 + $0x18] sm:$0xff]  ;;  %v90_v54 = vld [vmem:[%s373_s1] sm:$0xf] }
   0x3   :  { %v51_v8 = vmul.f32 %v261_v0, %v261_v0  ;;  %v291_v9 = vcombine.high %v271_v2, %v271_v2  ;;  %v52_v11 = vmul.f32 %v266_v1, %v266_v1  ;;  %v53_v14 = vmul.f32 %v271_v2, %v271_v2  ;;  %v221_v56 = vld [vmem:[%s374_s3 + $0x2] ss:$0 sm:$0xff]  ;;  %v219_v57 = vld [vmem:[%s374_s3] ss:$0 sm:$0xff]  ;;  %v220_v61 = vld [vmem:[%s374_s3 + $0x1] ss:$0 sm:$0xff] }
   0x4   :  { %v35_v6 = vsel %vm33_vm0, %v275_v3, 0.0  ;;  %v39_v13 = vsel %vm33_vm0, %v279_v4, 0.0  ;;  %v41_v19 = vsel %vm33_vm0, %v271_v2, 0.0  ;;  %v311_v22 = vcombine.high %v298_v12, %v298_v12 }
   0x5   :  { %v36_v10 = vadd.f32 %v35_v6, %v34_v5  ;;  %v59_v15 = vcombine.high %v51_v8, %v51_v8  ;;  %v67_v16 = vsel %vm33_vm0, %v51_v8, 0.0  ;;  %v60_v18 = vcombine.high %v52_v11, %v52_v11  ;;  %v92_v5 = vld [vmem:[%s375_s2] sm:$0xf] }
   0x6   :  { %v70_v21 = vsel %vm33_vm0, %v52_v11, 0.0  ;;  %v43_v25 = vsel %vm33_vm0, %v291_v9, 0.0  ;;  %v54_v26 = vmul.f32 %v298_v12, %v298_v12  ;;  %v61_v27 = vcombine.high %v53_v14, %v53_v14  ;;  %v222_v6 = vld [vmem:[%s374_s3 + $0x3] ss:$0 sm:$0xff] }
   0x7   :  { %v38_v17 = vadd.f32 %v37_v7, %v36_v10  ;;  %v68_v20 = vsel %vm33_vm0, %v59_v15, 0.0  ;;  %v72_v28 = vsel %vm33_vm0, %v60_v18, 0.0  ;;  %v45_v31 = vsel %vm33_vm0, %v298_v12, 0.0 }
   0x8   :  { %v69_v24 = vadd.f32 %v68_v20, %v67_v16  ;;  %v74_v32 = vsel %vm33_vm0, %v53_v14, 0.0  ;;  %v47_v35 = vsel %vm33_vm0, %v311_v22, 0.0  ;;  %v62_v36 = vcombine.high %v54_v26, %v54_v26 }
   0x9   :  { %v40_v23 = vadd.f32 %v39_v13, %v38_v17  ;;  %v76_v37 = vsel %vm33_vm0, %v61_v27, 0.0  ;;  %v78_v40 = vsel %vm33_vm0, %v54_v26, 0.0 }
   0xa   :  { %v71_v30 = vadd.f32 %v70_v21, %v69_v24  ;;  %v80_v43 = vsel %vm33_vm0, %v62_v36, 0.0 }
   0xb   :  { %v42_v29 = vadd.f32 %v41_v19, %v40_v23 }
   0xc   :  { %v73_v34 = vadd.f32 %v72_v28, %v71_v30 }
   0xd   :  { %v44_v33 = vadd.f32 %v43_v25, %v42_v29 }
   0xe   :  { %v75_v39 = vadd.f32 %v74_v32, %v73_v34 }
   0xf   :  { %v46_v38 = vadd.f32 %v45_v31, %v44_v33 }
  0x10   :  { %v77_v42 = vadd.f32 %v76_v37, %v75_v39 }
  0x11   :  { %v48_v41 = vadd.f32 %v47_v35, %v46_v38 }
  0x12   :  { %v79_v44 = vadd.f32 %v78_v40, %v77_v42 }
  0x13   :  { %49 = vadd.xlane.f32.xlu0 %v48_v41 }
  0x14   :  { %v81_v45 = vadd.f32 %v80_v43, %v79_v44 }
  0x17   :  { %82 = vadd.xlane.f32.xlu0 %v81_v45 }
  0x9c   :  { %v50_v47 = vpop.xlane.xlu0 %49 }
  0x9d   :  { %v84_v48 = vmul.f32 0.0009765625, %v50_v47 }
  0x9f   :  { %v86_v50 = vmul.f32 %v84_v48, %v84_v48 }
  0xa0   :  { %v83_v49 = vpop.xlane.xlu0 %82 }
  0xa1   :  { %v85_v51 = vmul.f32 0.0009765625, %v83_v49 }
  0xa3   :  { %v87_v52 = vsub.f32 %v85_v51, %v86_v50 }
  0xa5   :  { %v88_v53 = vadd.f32 1e-05, %v87_v52 }
  0xa7   :  { %230 = vrsqrt.f32 %v88_v53 }
  0xb4   :  { %v231_v55 = vpop.eup %230 }
  0xb5   :  { %v91_v58 = vmul.f32 %v231_v55, %v90_v54 }
  0xb7   :  { %v125_v59 = vmul.f32 %v221_v56, %v91_v58  ;;  %v123_v60 = vmul.f32 %v219_v57, %v91_v58  ;;  %v93_v62 = vmul.f32 %v91_v58, %v84_v48  ;;  %v124_v63 = vmul.f32 %v220_v61, %v91_v58 }
  0xb8   :  { %v126_v8 = vmul.f32 %v222_v6, %v91_v58 }
  0xb9   :  { %143 = vperm.xlu0 %225, %v125_v59   ;;  %133 = vperm.xlu1 %224, %v123_v60   ;;  %v94_v7 = vsub.f32 %v92_v5, %v93_v62 }
  0xbb   :  { %v127_v10 = vmul.f32 %v219_v57, %v94_v7  ;;  %v128_v11 = vmul.f32 %v220_v61, %v94_v7  ;;  %v129_v13 = vmul.f32 %v221_v56, %v94_v7  ;;  %v130_v14 = vmul.f32 %v222_v6, %v94_v7 }
  0xbd   :  { %138 = vperm.xlu1 %224, %v124_v63  }
  0xc1   :  { %148 = vperm.xlu1 %224, %v126_v8  }
  0xc5   :  { %161 = vperm.xlu1 %224, %v127_v10  }
  0xc9   :  { %166 = vperm.xlu1 %224, %v128_v11  }
  0xcd   :  { %171 = vperm.xlu1 %224, %v129_v13  }
  0xd1   :  { %176 = vperm.xlu1 %224, %v130_v14  }
 0x134   :  { %v134_v15 = vpop.permute.xlu1 %133  ;;  %v144_v28 = vpop.permute.xlu0 %143 }
 0x135   :  { %v151_v18 = vmul.f32 %v134_v15, %v261_v0  ;;  %v152_v19 = vmul.f32 %v134_v15, %v275_v3  ;;  %v155_v33 = vmul.f32 %v144_v28, %v271_v2  ;;  %v156_v34 = vmul.f32 %v144_v28, %v291_v9 }
 0x138   :  { %v139_v16 = vpop.permute.xlu1 %138 }
 0x139   :  { %v153_v24 = vmul.f32 %v139_v16, %v266_v1  ;;  %v154_v25 = vmul.f32 %v139_v16, %v279_v4 }
 0x13c   :  { %v149_v17 = vpop.permute.xlu1 %148 }
 0x13d   :  { %v157_v39 = vmul.f32 %v149_v17, %v298_v12  ;;  %v158_v40 = vmul.f32 %v149_v17, %v311_v22 }
 0x140   :  { %v162_v20 = vpop.permute.xlu1 %161 }
 0x141   :  { %v179_v21 = vadd.f32 %v162_v20, %v151_v18  ;;  %v180_v23 = vadd.f32 %v162_v20, %v152_v19 }
 0x143   :  { %v187_v26 = vmul.f32 %v179_v21, %v261_v0  ;;  %v188_v27 = vmul.f32 %v180_v23, %v275_v3 }
 0x144   :  { %v167_v29 = vpop.permute.xlu1 %166 }
 0x145   :  { %v203_v30 = vcombine.low %v187_v26, %v188_v27  ;;  %v181_v31 = vadd.f32 %v167_v29, %v153_v24  ;;  %v182_v32 = vadd.f32 %v167_v29, %v154_v25 }
 0x147   :  { %211 = vst [vmem:[%s376_s4] sm:$0xff] %v203_v30  ;;  %v189_v35 = vmul.f32 %v181_v31, %v266_v1  ;;  %v190_v36 = vmul.f32 %v182_v32, %v279_v4 }
 0x148   :  { %v172_v0 = vpop.permute.xlu1 %171 }
 0x149   :  { %v204_v37 = vcombine.low %v189_v35, %v190_v36  ;;  %v183_v3 = vadd.f32 %v172_v0, %v155_v33  ;;  %v184_v38 = vadd.f32 %v172_v0, %v156_v34 }
 0x14b   :  { %212 = vst [vmem:[%s376_s4 + $0x8] sm:$0xff] %v204_v37  ;;  %v191_v41 = vmul.f32 %v183_v3, %v271_v2  ;;  %v192_v42 = vmul.f32 %v184_v38, %v291_v9 }
 0x14c   :  { %v177_v43 = vpop.permute.xlu1 %176 }
 0x14d   :  { %v205_v1 = vcombine.low %v191_v41, %v192_v42  ;;  %v185_v44 = vadd.f32 %v177_v43, %v157_v39  ;;  %v186_v4 = vadd.f32 %v177_v43, %v158_v40 }
 0x14f   :  { %213 = vst [vmem:[%s376_s4 + $0x10] sm:$0xff] %v205_v1  ;;  %v193_v45 = vmul.f32 %v185_v44, %v298_v12  ;;  %v194_v46 = vmul.f32 %v186_v4, %v311_v22 }
 0x151   :  { %v206_v47 = vcombine.low %v193_v45, %v194_v46 }
 0x153   :  { %214 = vst [vmem:[%s376_s4 + $0x18] sm:$0xff] %v206_v47 }

</bundles_post_ra>
